<compile_context>
chip_gen: v6e
topology: v6e:2x2x1
jax: 0.10.0
libtpu: 0.0.40
codegen_flags: <defaults>
</compile_context>

<pallas_src>
import functools

import jax
import jax.numpy as jnp
from jax.experimental import pallas as pl
from jax.experimental.pallas import tpu as pltpu

GAMMA = 2.0
ALPHA = 0.25


def _round_up(x, m):
    return ((x + m - 1) // m) * m


def _cdiv(a, b):
    return -(-a // b)


def _pick_tb(B, C):
    # VMEM byte cap: 2 inputs x 2 pipeline buffers x tb * C * 4 B <= ~16 MiB.
    rows_cap = max(8, (((16 << 20) // (16 * max(C, 1))) // 8) * 8)
    # Aim for ~4 row blocks (>= 2 per TensorCore on v7x) so the core split is balanced.
    balanced = _round_up(max(_cdiv(B, 4), 8), 32)
    tb = min(1024, rows_cap, balanced, _round_up(B, 8))
    return max(8, _round_up(tb, 8))


def _focal_kernel(x_ref, t_ref, w_ref, out_ref, *,
                  gamma, one_minus_alpha, tb, n_rows, n_par, full_blocks, mask_rows):
    p = pl.program_id(0)          # parallel (core-split) axis
    i = pl.program_id(1)          # reduction axis over interleaved row blocks

    @pl.when(i == 0)
    def _():
        out_ref[...] = jnp.zeros_like(out_ref)

    x = x_ref[...].astype(jnp.float32)              # (tb, C) logits
    t = t_ref[...]                                  # (tb, C) targets, native dtype
    aw = w_ref[...]                                 # (1, C)  alpha * pos_weight (f32)

    is_pos = t == jnp.array(1, t.dtype)             # compare without upcasting targets

    # Fold the per-target branches onto y = where(t==1, -x, x):
    #   bce * alpha_t = where(t==1, alpha*w, 1-alpha) * softplus(y)
    #   (1 - pt)      = sigmoid(y)
    y = jnp.where(is_pos, -x, x)
    ax = jnp.abs(x)                                 # == |y|
    e = jnp.exp(-ax)                                # exp(-|y|) in (0, 1]
    denom = 1.0 + e
    lp = jnp.log(denom)                             # ~= log1p(exp(-|y|))
    sp = jnp.maximum(y, 0.0) + lp                   # softplus(y): the BCE log term
    inv = pl.reciprocal(denom, approx=True)         # EUP slot, nearly free
    omp = jnp.where(y >= 0.0, inv, e * inv)         # sigmoid(y) == 1 - pt

    if gamma == 2.0:
        focal_w = omp * omp
    else:
        # log-sigmoid form: sigmoid(y)**gamma = exp(gamma * (min(y,0) - lp))
        focal_w = jnp.exp(gamma * (jnp.minimum(y, 0.0) - lp))

    coeff = jnp.where(is_pos, aw, one_minus_alpha)  # alpha_t and pos_weight, fused
    f_loss = coeff * focal_w * sp

    C = f_loss.shape[-1]

    def accum(val):
        # Partial sum kept vreg-shaped: (tb, C) -> (8, C). Pure VPU adds, no XLU.
        out_ref[...] += val.reshape(tb // 8, 8, C).sum(axis=0)[None]

    if mask_rows:
        g = i * n_par + p                           # global (interleaved) block index

        @pl.when(g < full_blocks)                   # full blocks: unmasked fast path
        def _():
            accum(f_loss)

        @pl.when(g >= full_blocks)                  # edge / over-covered blocks only
        def _():
            rows = jax.lax.broadcasted_iota(jnp.int32, f_loss.shape, 0) + g * tb
            accum(jnp.where(rows < n_rows, f_loss, 0.0))
    else:
        accum(f_loss)


def focal_loss_multiclass(inputs, targets, weights, *, gamma=GAMMA, alpha=ALPHA,
                          reduction="mean", tb=None):
    """inputs, targets: (B, C); weights: (C,) pos_weight. Returns scalar loss.

    Targets are assumed hard {0,1} (as the PyTorch module's `targets == 1` implies);
    soft targets in (0,1) are not supported by the where-based BCE.
    """
    B, C = inputs.shape
    # TODO(synk): if C is not a multiple of 128, reshape (B, C) -> (B/k, k*C) host-side
    # (metadata-only) and tile the weight row to keep the last dim lane-dense.

    if tb is None:
        tb = _pick_tb(B, C)
    tb = max(8, _round_up(min(tb, _round_up(B, 8)), 8))

    n_blocks = _cdiv(B, tb)
    n_par = 2 if n_blocks >= 2 else 1               # v7x megacore split; no-op on v5e/v6e
    steps = _cdiv(n_blocks, n_par)
    mask_rows = steps * n_par * tb != B             # grid over-covers the batch
    full_blocks = B // tb

    # Fold scalar alpha into the pos_weight row: coeff = where(t==1, alpha*w, 1-alpha).
    if alpha is not None:
        aw = (float(alpha) * weights.astype(jnp.float32)).reshape(1, C)
        one_minus_alpha = 1.0 - float(alpha)
    else:
        aw = weights.astype(jnp.float32).reshape(1, C)
        one_minus_alpha = 1.0

    kernel = functools.partial(
        _focal_kernel,
        gamma=float(gamma),
        one_minus_alpha=float(one_minus_alpha),
        tb=tb, n_rows=B, n_par=n_par,
        full_blocks=full_blocks, mask_rows=mask_rows,
    )

    # Interleave blocks across the parallel axis so both cores stay balanced; clamp the
    # block index when the grid over-covers (the masked path zeroes those rows anyway).
    if steps * n_par > n_blocks:
        row_block = lambda p, i: (jnp.minimum(i * n_par + p, n_blocks - 1), 0)
    else:
        row_block = lambda p, i: (i * n_par + p, 0)

    partials = pl.pallas_call(
        kernel,
        out_shape=jax.ShapeDtypeStruct((n_par, 8, C), jnp.float32),
        grid_spec=pltpu.PrefetchScalarGridSpec(
            num_scalar_prefetch=0,
            grid=(n_par, steps),
            in_specs=[
                pl.BlockSpec((tb, C), row_block),           # logits tile
                pl.BlockSpec((tb, C), row_block),           # targets tile (native dtype)
                pl.BlockSpec((1, C), lambda p, i: (0, 0)),  # alpha*pos_weight (resident)
            ],
            out_specs=pl.BlockSpec((1, 8, C), lambda p, i: (p, 0, 0)),
        ),
        compiler_params=pltpu.CompilerParams(
            dimension_semantics=("parallel", "arbitrary"),
            vmem_limit_bytes=32 * 1024 * 1024,
        ),
    )(inputs, targets, aw)

    total = jnp.sum(partials, dtype=jnp.float32)    # final cross-lane reduce in XLA
    if reduction == "mean":
        return total / jnp.float32(B * C)
    elif reduction == "sum":
        return total
    else:
        # TODO(synk): reduction='none' would need the full (B, C) elementwise map output.
        raise NotImplementedError("only 'mean' and 'sum' reductions implemented")


def _reference(inputs, targets, weights, gamma=GAMMA, alpha=ALPHA):
    x = inputs.astype(jnp.float32)
    t = targets.astype(jnp.float32)
    w = weights.astype(jnp.float32)[None, :]
    sp = lambda z: jnp.maximum(z, 0.0) + jnp.log1p(jnp.exp(-jnp.abs(z)))
    bce = w * t * sp(-x) + (1.0 - t) * sp(x)
    probs = jax.nn.sigmoid(x)
    pt = jnp.where(t == 1.0, probs, 1.0 - probs)
    f = (1.0 - pt) ** gamma * bce
    alpha_t = jnp.where(t == 1.0, alpha, 1.0 - alpha)
    return jnp.mean(alpha_t * f)


if __name__ == "__main__":
    key = jax.random.PRNGKey(0)
    k1, k2 = jax.random.split(key)

    B, C = 32, 128  # batch=32, num_classes=128
    inputs = jax.random.normal(k1, (B, C), dtype=jnp.float32) * 2.0
    targets = (jax.random.uniform(k2, (B, C)) > 0.8).astype(jnp.float32)
    # deterministic per-class pos_weight (shape (C,)), as in the module __init__
    weights = 0.5 + jnp.arange(C, dtype=jnp.float32) / C  # in [0.5, 1.5)

    # 1) single-block path (whole batch in one tile)
    loss = jax.block_until_ready(focal_loss_multiclass(inputs, targets, weights))
    ref = _reference(inputs, targets, weights)
    assert jnp.allclose(loss, ref, rtol=2e-3, atol=1e-6), (loss, ref)

    # 2) multi-block + 2-way interleaved core-split accumulation path
    loss2 = jax.block_until_ready(focal_loss_multiclass(inputs, targets, weights, tb=8))
    assert jnp.allclose(loss2, ref, rtol=2e-3, atol=1e-6), (loss2, ref)

    # 3) non-divisible batch -> no host pad; edge block masked inside the kernel
    loss3 = jax.block_until_ready(
        focal_loss_multiclass(inputs[:30], targets[:30], weights))
    ref3 = _reference(inputs[:30], targets[:30], weights)
    assert jnp.allclose(loss3, ref3, rtol=2e-3, atol=1e-6), (loss3, ref3)

    # 4) ragged + multi-block + over-covering grid (clamped block index path)
    loss4 = jax.block_until_ready(
        focal_loss_multiclass(inputs[:30], targets[:30], weights, tb=8))
    assert jnp.allclose(loss4, ref3, rtol=2e-3, atol=1e-6), (loss4, ref3)

    # 5) sum reduction
    loss5 = jax.block_until_ready(
        focal_loss_multiclass(inputs, targets, weights, reduction="sum"))
    assert jnp.allclose(loss5, ref * (B * C), rtol=2e-3, atol=1e-4), (loss5, ref * (B * C))

    print("KERNEL_OK")
</pallas_src>

<mosaic_0001>
module attributes {stable_mosaic.version = 11 : i64} {
  func.func @_focal_kernel(%arg0: i32, %arg1: i32, %arg2: memref<32x128xf32, #tpu.memory_space<vmem>>, %arg3: memref<32x128xf32, #tpu.memory_space<vmem>>, %arg4: memref<1x128xf32, #tpu.memory_space<vmem>>, %arg5: memref<1x8x128xf32, #tpu.memory_space<vmem>>) attributes {dimension_semantics = [#tpu.dimension_semantics<parallel>, #tpu.dimension_semantics<arbitrary>], iteration_bounds = array<i64: 1, 1>, scalar_prefetch = 0 : i64, scratch_operands = 0 : i64, tpu.core_type = #tpu.core_type<tc>, window_params = [{transform_indices = @transform_0, window_bounds = array<i64: 32, 128>}, {transform_indices = @transform_1, window_bounds = array<i64: 32, 128>}, {pipeline_mode = #tpu.pipeline_mode<synchronous>, transform_indices = @transform_2, window_bounds = array<i64: 1, 128>}, {transform_indices = @transform_3, window_bounds = array<i64: 1, 8, 128>}]} {
    %c0_i32 = arith.constant 0 : i32
    %0 = arith.cmpi eq, %arg1, %c0_i32 : i32
    %1 = arith.extui %0 : i1 to i32
    %c0_i32_0 = arith.constant 0 : i32
    %2 = arith.cmpi ne, %1, %c0_i32_0 : i32
    scf.if %2 {
      %cst_19 = arith.constant 0.000000e+00 : f32
      %39 = vector.broadcast %cst_19 : f32 to vector<1x8x128xf32>
      %c0_20 = arith.constant 0 : index
      %c0_21 = arith.constant 0 : index
      %c0_22 = arith.constant 0 : index
      %40 = vector.load %arg5[%c0_20, %c0_21, %c0_22] : memref<1x8x128xf32, #tpu.memory_space<vmem>>, vector<1x8x128xf32>
      tpu.vector_store %arg5[%c0_20, %c0_21, %c0_22], %39 {strides = array<i32>} : memref<1x8x128xf32, #tpu.memory_space<vmem>>, vector<1x8x128xf32>,
    } else {
    }
    %c0 = arith.constant 0 : index
    %c0_1 = arith.constant 0 : index
    %3 = vector.load %arg2[%c0, %c0_1] : memref<32x128xf32, #tpu.memory_space<vmem>>, vector<32x128xf32>
    %c0_2 = arith.constant 0 : index
    %c0_3 = arith.constant 0 : index
    %4 = vector.load %arg3[%c0_2, %c0_3] : memref<32x128xf32, #tpu.memory_space<vmem>>, vector<32x128xf32>
    %c0_4 = arith.constant 0 : index
    %c0_5 = arith.constant 0 : index
    %5 = vector.load %arg4[%c0_4, %c0_5] : memref<1x128xf32, #tpu.memory_space<vmem>>, vector<1x128xf32>
    %cst = arith.constant 1.000000e+00 : f32
    %6 = vector.broadcast %cst : f32 to vector<32x128xf32>
    %7 = arith.cmpf oeq, %4, %6 : vector<32x128xf32>
    %cst_6 = arith.constant 0.000000e+00 : f32
    %8 = vector.broadcast %cst_6 : f32 to vector<32x128xf32>
    %9 = arith.subf %8, %3 : vector<32x128xf32>
    %10 = arith.select %7, %9, %3 : vector<32x128xi1>, vector<32x128xf32>
    %11 = math.absf %3 : vector<32x128xf32>
    %cst_7 = arith.constant 0.000000e+00 : f32
    %12 = vector.broadcast %cst_7 : f32 to vector<32x128xf32>
    %13 = arith.subf %12, %11 : vector<32x128xf32>
    %14 = math.exp %13 : vector<32x128xf32>
    %cst_8 = arith.constant 1.000000e+00 : f32
    %15 = vector.broadcast %cst_8 : f32 to vector<32x128xf32>
    %16 = arith.addf %15, %14 : vector<32x128xf32>
    %17 = math.log %16 : vector<32x128xf32>
    %cst_9 = arith.constant 0.000000e+00 : f32
    %18 = vector.broadcast %cst_9 : f32 to vector<32x128xf32>
    %19 = arith.maximumf %10, %18 : vector<32x128xf32>
    %20 = arith.addf %19, %17 : vector<32x128xf32>
    %21 = tpu.reciprocal %16 {approx = true} : vector<32x128xf32> -> vector<32x128xf32>
    %cst_10 = arith.constant 0.000000e+00 : f32
    %22 = vector.broadcast %cst_10 : f32 to vector<32x128xf32>
    %23 = arith.cmpf oge, %10, %22 : vector<32x128xf32>
    %24 = arith.mulf %14, %21 : vector<32x128xf32>
    %25 = arith.select %23, %21, %24 : vector<32x128xi1>, vector<32x128xf32>
    %26 = arith.mulf %25, %25 : vector<32x128xf32>
    %cst_11 = arith.constant 7.500000e-01 : f32
    %27 = vector.shape_cast %5 : vector<1x128xf32> to vector<1x128xf32>
    %28 = vector.broadcast %27 : vector<1x128xf32> to vector<32x128xf32>
    %29 = vector.broadcast %cst_11 : f32 to vector<32x128xf32>
    %30 = arith.select %7, %28, %29 : vector<32x128xi1>, vector<32x128xf32>
    %31 = arith.mulf %30, %26 : vector<32x128xf32>
    %32 = arith.mulf %31, %20 : vector<32x128xf32>
    %c0_12 = arith.constant 0 : index
    %c0_13 = arith.constant 0 : index
    %c0_14 = arith.constant 0 : index
    %33 = vector.load %arg5[%c0_12, %c0_13, %c0_14] : memref<1x8x128xf32, #tpu.memory_space<vmem>>, vector<1x8x128xf32>
    %34 = vector.shape_cast %32 : vector<32x128xf32> to vector<4x8x128xf32>
    %cst_15 = arith.constant dense<0.000000e+00> : vector<8x128xf32>
    %35 = vector.multi_reduction <add>, %34, %cst_15 [0] : vector<4x8x128xf32> to vector<8x128xf32>
    %36 = vector.shape_cast %35 : vector<8x128xf32> to vector<1x8x128xf32>
    %37 = arith.addf %33, %36 : vector<1x8x128xf32>
    %c0_16 = arith.constant 0 : index
    %c0_17 = arith.constant 0 : index
    %c0_18 = arith.constant 0 : index
    %38 = vector.load %arg5[%c0_16, %c0_17, %c0_18] : memref<1x8x128xf32, #tpu.memory_space<vmem>>, vector<1x8x128xf32>
    tpu.vector_store %arg5[%c0_16, %c0_17, %c0_18], %37 {strides = array<i32>} : memref<1x8x128xf32, #tpu.memory_space<vmem>>, vector<1x8x128xf32>,
    return
  }
  func.func @transform_0(%arg0: i32, %arg1: i32) -> (i32, i32) {
    %c1_i32 = arith.constant 1 : i32
    %0 = arith.muli %arg1, %c1_i32 : i32
    %1 = arith.addi %0, %arg0 : i32
    %c0_i32 = arith.constant 0 : i32
    %c0_i32_0 = arith.constant 0 : i32
    return %1, %c0_i32 : i32, i32
  }
  func.func @transform_1(%arg0: i32, %arg1: i32) -> (i32, i32) {
    %c1_i32 = arith.constant 1 : i32
    %0 = arith.muli %arg1, %c1_i32 : i32
    %1 = arith.addi %0, %arg0 : i32
    %c0_i32 = arith.constant 0 : i32
    %c0_i32_0 = arith.constant 0 : i32
    return %1, %c0_i32 : i32, i32
  }
  func.func @transform_2(%arg0: i32, %arg1: i32) -> (i32, i32) {
    %c0_i32 = arith.constant 0 : i32
    %c0_i32_0 = arith.constant 0 : i32
    %c0_i32_1 = arith.constant 0 : i32
    return %c0_i32, %c0_i32_0 : i32, i32
  }
  func.func @transform_3(%arg0: i32, %arg1: i32) -> (i32, i32, i32) {
    %c0_i32 = arith.constant 0 : i32
    %c0_i32_0 = arith.constant 0 : i32
    %c0_i32_1 = arith.constant 0 : i32
    return %arg0, %c0_i32, %c0_i32_0 : i32, i32, i32
  }
}

</mosaic_0001>

<bundles_post_ra>
// kernel: tpu_custom_call.1
= control target key start
LH: loop header
LB: loop body
LE: loop exit
PB: predicated region body
PF: predicated region fallthrough
CT: control target
= control target key end

     0   :  { %8 = vsyncpa [#allocation3], 0  ;;  %s322_s0 = inlined_call_operand.hbm [shape: f32[32,128], index: 0, kind: input, shape index: {}]   ;;  %s323_s1 = inlined_call_operand.hbm [shape: f32[32,128], index: 1, kind: input, shape index: {}]   ;;  %s324_s2 = inlined_call_operand.vmem [shape: f32[1,128], index: 2, kind: input, shape index: {}]   ;;  %s325_s3 = inlined_call_operand.hbm [shape: f32[1,8,128], index: 3, kind: output, shape index: {}]  }
   0x1   :  { %9 = vsyncpa [#allocation6], 0 }
   0x2   :  { %10 = vsyncpa [#allocation4], 0  ;;  %s274_s12 = smov [#allocation2]  }
   0x3   :  { %s20_s13 = sshll.u32 %s274_s12, 4  ;;  %s21_s13 = int_to_ptr.vmem [resolvable:$true] %s20_s13 }
   0x4   :  { %s216_s14 = scalar_lea.vmem %s21_s13, 512  ;;  %p221_p1 = scmp.lt.s32.totalorder %s21_s13, %s21_s13 }
   0x5   :  { %p217_p0 = scmp.ne.s32.totalorder %s21_s13, %s216_s14  ;;  %p222_p2 = scmp.lt.s32.totalorder %s216_s14, %s216_s14 }
   0x7   :  { %p223_p3 = por %p222_p2, %p221_p1 }
   0x9   :  { %p224_p4 = pnand %p223_p3, %p217_p0 }
   0xb   :  { %227 = shalt.err (!%p224_p4)
}
   0xc   :  { %s275_s15 = smov 128   ;;  %s276_s16 = smov 8  }
   0xd   :  { %26 = dma.hbm_to_vmem [thread:$0]  %s322_s0, 512, %s21_s13, [#allocation3], %s275_s15, %s275_s15, %s276_s16  }
   0xe   :  { %s277_s19 = smov [#allocation5]  }
   0xf   :  { %s36_s20 = sshll.u32 %s277_s19, 4  ;;  %s37_s20 = int_to_ptr.vmem [resolvable:$true] %s36_s20 }
  0x10   :  { %s236_s21 = scalar_lea.vmem %s37_s20, 512  ;;  %p241_p6 = scmp.lt.s32.totalorder %s37_s20, %s37_s20 }
  0x11   :  { %p237_p5 = scmp.ne.s32.totalorder %s37_s20, %s236_s21  ;;  %p242_p7 = scmp.lt.s32.totalorder %s236_s21, %s236_s21 }
  0x13   :  { %p243_p8 = por %p242_p7, %p241_p6 }
  0x15   :  { %p244_p9 = pnand %p243_p8, %p237_p5 }
  0x17   :  { %247 = shalt.err (!%p244_p9)
}
  0x18   :  { %42 = dma.hbm_to_vmem [thread:$0]  %s323_s1, 512, %s37_s20, [#allocation6], %s275_s15, %s275_s15, %s276_s16  }
  0x19   :  { %268 = dma.done.wait [#allocation3], 512  }
  0x1a   :  { %269 = vsyncadd [#allocation3], 4294966784 }
  0x1b   :  { %270 = dma.done.wait [#allocation6], 512  }
  0x1c   :  { %271 = vsyncadd [#allocation6], 4294966784  ;;  %v60_v0 = vld [vmem:[#allocation2] sm:$0xff]  ;;  %v61_v1 = vld [vmem:[#allocation2 + $0x8] sm:$0xff] }
  0x1d   :  { %v62_v2 = vld [vmem:[#allocation2 + $0x10] sm:$0xff]  ;;  %v63_v3 = vld [vmem:[#allocation2 + $0x18] sm:$0xff]  ;;  %v81_v4 = vand.u32 2147483647, %v60_v0  ;;  %v82_v5 = vand.u32 2147483647, %v61_v1 }
  0x1e   :  { %v83_v6 = vand.u32 2147483647, %v62_v2  ;;  %v84_v7 = vand.u32 2147483647, %v63_v3  ;;  %v64_v24 = vld [vmem:[#allocation5] sm:$0xff]  ;;  %v65_v25 = vld [vmem:[#allocation5 + $0x8] sm:$0xff] }
  0x1f   :  { %v85_v8 = vsub.f32 0.0, %v81_v4  ;;  %v86_v9 = vsub.f32 0.0, %v82_v5  ;;  %v66_v26 = vld [vmem:[#allocation5 + $0x10] sm:$0xff]  ;;  %v67_v27 = vld [vmem:[#allocation5 + $0x18] sm:$0xff]  ;;  %v73_v28 = vsub.f32 0.0, %v60_v0  ;;  %v74_v29 = vsub.f32 0.0, %v61_v1 }
  0x20   :  { %v87_v10 = vsub.f32 0.0, %v83_v6  ;;  %v88_v11 = vsub.f32 0.0, %v84_v7  ;;  %vm69_vm0 = vcmp.eq.f32.partialorder %v64_v24, 1.0  ;;  %vm70_vm1 = vcmp.eq.f32.partialorder %v65_v25, 1.0  ;;  %v177_v40 = vld [vmem:[%s324_s2] ss:$0 sm:$0xff] }
  0x21   :  { %v89_v12 = vmul.f32 1.442695, %v85_v8  ;;  %v91_v13 = vmul.f32 1.442695, %v86_v9  ;;  %v75_v30 = vsub.f32 0.0, %v62_v2  ;;  %v76_v31 = vsub.f32 0.0, %v63_v3 }
  0x22   :  { %v93_v14 = vmul.f32 1.442695, %v87_v10  ;;  %v95_v15 = vmul.f32 1.442695, %v88_v11  ;;  %vm71_vm2 = vcmp.eq.f32.partialorder %v66_v26, 1.0  ;;  %vm72_vm3 = vcmp.eq.f32.partialorder %v67_v27, 1.0 }
  0x23   :  { %184 = vpow2.f32 %v89_v12  ;;  %v77_v34 = vsel %vm69_vm0, %v73_v28, %v60_v0  ;;  %v78_v35 = vsel %vm70_vm1, %v74_v29, %v61_v1  ;;  %v79_v37 = vsel %vm71_vm2, %v75_v30, %v62_v2  ;;  %s278_s2 = smov [#allocation7]  }
  0x24   :  { %186 = vpow2.f32 %v91_v13  ;;  %v80_v38 = vsel %vm72_vm3, %v76_v31, %v63_v3  ;;  %v109_v41 = vmax.f32 %v77_v34, 0.0  ;;  %v110_v42 = vmax.f32 %v78_v35, 0.0  ;;  %s167_s24 = sshll.u32 %s278_s2, 4  ;;  %s168_s24 = int_to_ptr.vmem [resolvable:$true] %s167_s24 }
  0x25   :  { %188 = vpow2.f32 %v93_v14  ;;  %v111_v43 = vmax.f32 %v79_v37, 0.0  ;;  %v112_v46 = vmax.f32 %v80_v38, 0.0  ;;  %vm121_vm4 = vcmp.ge.f32.partialorder %v77_v34, 0.0  ;;  %s248_s25 = scalar_lea.vmem %s168_s24, 128  ;;  %p253_p11 = scmp.lt.s32.totalorder %s168_s24, %s168_s24 }
  0x26   :  { %190 = vpow2.f32 %v95_v15  ;;  %vm122_vm5 = vcmp.ge.f32.partialorder %v78_v35, 0.0  ;;  %vm123_vm6 = vcmp.ge.f32.partialorder %v79_v37, 0.0  ;;  %vm124_vm7 = vcmp.ge.f32.partialorder %v80_v38, 0.0  ;;  %p249_p10 = scmp.ne.s32.totalorder %s168_s24, %s248_s25  ;;  %p254_p12 = scmp.lt.s32.totalorder %s248_s25, %s248_s25 }
  0x27   :  { %v143_v53 = vsel %vm69_vm0, %v177_v40, 0.75  ;;  %v144_v54 = vsel %vm70_vm1, %v177_v40, 0.75  ;;  %v145_v59 = vsel %vm71_vm2, %v177_v40, 0.75  ;;  %v146_v3 = vsel %vm72_vm3, %v177_v40, 0.75 }
  0x28   :  { %p255_p13 = por %p254_p12, %p253_p11 }
  0x2a   :  { %p256_p0 = pnand %p255_p13, %p249_p10 }
  0x30   :  { %v185_v16 = vpop.eup %184 }
  0x31   :  { %v187_v17 = vpop.eup %186  ;;  %v97_v18 = vadd.f32 1.0, %v185_v16 }
  0x32   :  { %v189_v19 = vpop.eup %188  ;;  %v98_v20 = vadd.f32 1.0, %v187_v17 }
  0x33   :  { %v191_v21 = vpop.eup %190  ;;  %v99_v22 = vadd.f32 1.0, %v189_v19  ;;  %192 = vlog2.f32 %v97_v18 }
  0x34   :  { %v100_v23 = vadd.f32 1.0, %v191_v21  ;;  %194 = vlog2.f32 %v98_v20 }
  0x35   :  { %196 = vlog2.f32 %v99_v22 }
  0x36   :  { %198 = vlog2.f32 %v100_v23 }
  0x37   :  { %200 = vrcp.f32 %v97_v18 }
  0x38   :  { %202 = vrcp.f32 %v98_v20 }
  0x39   :  { %204 = vrcp.f32 %v99_v22 }
  0x3a   :  { %206 = vrcp.f32 %v100_v23 }
  0x40   :  { %v193_v32 = vpop.eup %192 }
  0x41   :  { %v195_v33 = vpop.eup %194  ;;  %v102_v45 = vmul.f32 0.6931472, %v193_v32 }
  0x42   :  { %v197_v36 = vpop.eup %196  ;;  %v104_v48 = vmul.f32 0.6931472, %v195_v33 }
  0x43   :  { %v199_v39 = vpop.eup %198  ;;  %v106_v51 = vmul.f32 0.6931472, %v197_v36  ;;  %v113_v60 = vadd.f32 %v109_v41, %v102_v45 }
  0x44   :  { %v201_v44 = vpop.eup %200  ;;  %v108_v56 = vmul.f32 0.6931472, %v199_v39  ;;  %v114_v0 = vadd.f32 %v110_v42, %v104_v48 }
  0x45   :  { %v203_v47 = vpop.eup %202  ;;  %v125_v49 = vmul.f32 %v201_v44, %v185_v16  ;;  %v115_v4 = vadd.f32 %v111_v43, %v106_v51 }
  0x46   :  { %v205_v50 = vpop.eup %204  ;;  %v126_v52 = vmul.f32 %v203_v47, %v187_v17  ;;  %v116_v8 = vadd.f32 %v112_v46, %v108_v56 }
  0x47   :  { %v207_v55 = vpop.eup %206  ;;  %v127_v57 = vmul.f32 %v205_v50, %v189_v19  ;;  %v129_v58 = vsel %vm121_vm4, %v201_v44, %v125_v49 }
  0x48   :  { %v128_v61 = vmul.f32 %v207_v55, %v191_v21  ;;  %v130_v62 = vsel %vm122_vm5, %v203_v47, %v126_v52  ;;  %v133_v63 = vmul.f32 %v129_v58, %v129_v58 }
  0x49   :  { %v131_v1 = vsel %vm123_vm6, %v205_v50, %v127_v57  ;;  %v134_v2 = vmul.f32 %v130_v62, %v130_v62 }
  0x4a   :  { %v132_v5 = vsel %vm124_vm7, %v207_v55, %v128_v61  ;;  %v135_v6 = vmul.f32 %v131_v1, %v131_v1  ;;  %v147_v7 = vmul.f32 %v143_v53, %v133_v63 }
  0x4b   :  { %v136_v9 = vmul.f32 %v132_v5, %v132_v5  ;;  %v148_v10 = vmul.f32 %v144_v54, %v134_v2 }
  0x4c   :  { %v149_v11 = vmul.f32 %v145_v59, %v135_v6  ;;  %v151_v12 = vmul.f32 %v147_v7, %v113_v60 }
  0x4d   :  { %v150_v13 = vmul.f32 %v146_v3, %v136_v9  ;;  %v152_v14 = vmul.f32 %v148_v10, %v114_v0 }
  0x4e   :  { %v153_v15 = vmul.f32 %v149_v11, %v115_v4 }
  0x4f   :  { %v154_v16 = vmul.f32 %v150_v13, %v116_v8  ;;  %v156_v17 = vadd.f32 %v152_v14, %v151_v12 }
  0x51   :  { %v157_v18 = vadd.f32 %v156_v17, %v153_v15 }
  0x53   :  { %v158_v19 = vadd.f32 %v157_v18, %v154_v16 }
  0x55   :  { %160 = vst [vmem:[#allocation7] sm:$0xff] %v158_v19 }
  0x56   :  { %259 = shalt.err (!%p256_p0)
}
  0x57   :  { %170 = dma.vmem_to_hbm [thread:$0]  %s168_s24, 128, %s325_s3, [#allocation4]  }
  0x58   :  { %272 = dma.done.wait [#allocation4], 128  }
  0x59   :  { %273 = vsyncadd [#allocation4], 4294967168 }
  0x5a   :  { %174 = vsyncpa [#allocation3], 1 }
  0x5b   :  { %175 = vsyncpa [#allocation6], 1 }
  0x5c   :  { %176 = vsyncpa [#allocation4], 1 }

</bundles_post_ra>
